<compile_context>
chip_gen: v5e
topology: v5e:2x2
jax: 0.10.0
libtpu: 0.0.40
codegen_flags: <defaults>
</compile_context>

<pallas_src>
import jax
import jax.numpy as jnp
from jax.experimental import pallas as pl
from jax.experimental.pallas import tpu as pltpu


def mlp_kernel(x_ref, w1_ref, b1_ref, w2_ref, b2_ref, o_ref):
    # fc1 on the MXU: cast x to bf16 at the dot input, accumulate in f32.
    x = x_ref[...].astype(jnp.bfloat16)
    h = jnp.dot(x, w1_ref[...], preferred_element_type=jnp.float32)
    # Bias + ReLU in f32 on the VPU (b1 is (1, 128) and broadcasts).
    h = jnp.maximum(h + b1_ref[...], 0.0)
    # fc2 on the MXU: (tb, 128) @ (128, 10); narrow N is fine, MXU has slack.
    out = jnp.dot(h.astype(jnp.bfloat16), w2_ref[...],
                  preferred_element_type=jnp.float32)
    o_ref[...] = (out + b2_ref[...]).astype(o_ref.dtype)


def prepare_params(w1, b1, w2, b2):
    """One-time weight prep: bf16 weights for the MXU, f32 bias rows.

    w1: (784, 128), b1: (128,) or (1, 128), w2: (128, 10), b2: (10,) or (1, 10).
    Call once and reuse the result across forward calls (hoists the casts out
    of the per-call path).
    """
    return (w1.astype(jnp.bfloat16),
            b1.reshape(1, -1).astype(jnp.float32),
            w2.astype(jnp.bfloat16),
            b2.reshape(1, -1).astype(jnp.float32))


def _choose_tb(B, tb, sub):
    if tb is None:
        # Big tiles amortize the ~0.35 us per-grid-step overhead and give the
        # DMA engine large contiguous transfers, but keep >= 2 grid steps so
        # the "parallel" axis shards batch tiles across both v7x TensorCores.
        tb = min(1024, max(sub, pl.cdiv(B, 2)))
    tb = max(sub, min(tb, max(B, sub), 2048))   # tb <= 2048: stays inside the
    tb = pl.cdiv(tb, sub) * sub                 # default scoped VMEM limit.
    return tb


def net_forward(x, params, *, tb=None):
    """x: (B, 784) f32 (or bf16).  params: output of prepare_params()."""
    w1, b1, w2, b2 = params
    B, D_in = x.shape
    H = w1.shape[1]          # 128
    D_out = w2.shape[1]      # 10

    # Sublane multiple for the x / output blocks: 8 for f32, 16 for bf16 x.
    SUB = 16 if x.dtype == jnp.bfloat16 else 8
    tb = _choose_tb(B, tb, SUB)
    Bp = pl.cdiv(B, tb) * tb

    # Only pad the batch when tb does not divide B (never in the common case).
    if Bp != B:
        x = jnp.pad(x, ((0, Bp - B), (0, 0)))

    grid = (Bp // tb,)

    cost = pl.CostEstimate(
        flops=2 * Bp * (D_in * H + H * D_out),
        transcendentals=0,
        bytes_accessed=(Bp * D_in * x.dtype.itemsize   # x tiles
                        + D_in * H * 2                 # W1 (bf16)
                        + H * D_out * 2                # W2 (bf16)
                        + (H + D_out) * 4              # biases (f32)
                        + Bp * D_out * 4),             # output (f32)
    )

    out = pl.pallas_call(
        mlp_kernel,
        out_shape=jax.ShapeDtypeStruct((Bp, D_out), jnp.float32),
        grid_spec=pltpu.PrefetchScalarGridSpec(
            num_scalar_prefetch=0,
            grid=grid,
            in_specs=[
                # x tile: full-dim last axis (784) is exempt from the 128 rule.
                pl.BlockSpec((tb, D_in), lambda i: (i, 0)),
                pl.BlockSpec((D_in, H), lambda i: (0, 0)),    # W1 (resident)
                pl.BlockSpec((1, H), lambda i: (0, 0)),       # b1 (resident)
                pl.BlockSpec((H, D_out), lambda i: (0, 0)),   # W2 (resident)
                pl.BlockSpec((1, D_out), lambda i: (0, 0)),   # b2 (resident)
            ],
            # Narrow output block: full-dim last axis (10) is legal; cuts the
            # output HBM write from 512 B/row to 40 B/row.
            out_specs=pl.BlockSpec((tb, D_out), lambda i: (i, 0)),
        ),
        compiler_params=pltpu.CompilerParams(
            dimension_semantics=("parallel",)),
        cost_estimate=cost,
    )(x, w1, b1, w2, b2)

    return out[:B] if Bp != B else out


def init_params(key):
    # Deterministic init mimicking nn.Linear's U(-1/sqrt(fan_in), 1/sqrt(fan_in)).
    k1, k2, k3, k4 = jax.random.split(key, 4)
    bound1 = 1.0 / jnp.sqrt(784.0)
    bound2 = 1.0 / jnp.sqrt(128.0)
    w1 = jax.random.uniform(k1, (784, 128), jnp.float32, -bound1, bound1)
    b1 = jax.random.uniform(k2, (1, 128), jnp.float32, -bound1, bound1)
    w2 = jax.random.uniform(k3, (128, 10), jnp.float32, -bound2, bound2)
    b2 = jax.random.uniform(k4, (1, 10), jnp.float32, -bound2, bound2)
    return w1, b1, w2, b2


if __name__ == "__main__":
    key = jax.random.PRNGKey(0)
    kx, kp = jax.random.split(key)

    B = 256
    x = jax.random.normal(kx, (B, 28 * 28), jnp.float32)
    w1, b1, w2, b2 = init_params(kp)

    # One-time weight prep (bf16 casts) hoisted out of the forward call.
    params = prepare_params(w1, b1, w2, b2)

    # Default tb -> 128 here: grid of 2 steps (one tile per v7x TensorCore).
    out = net_forward(x, params)
    out = jax.block_until_ready(out)
    assert out.shape == (B, 10)

    # Reference with the same bf16 casts of the matmul inputs (f32 accumulate),
    # matching the kernel's numerics.
    xb = x.astype(jnp.bfloat16).astype(jnp.float32)
    w1b = w1.astype(jnp.bfloat16).astype(jnp.float32)
    w2b = w2.astype(jnp.bfloat16).astype(jnp.float32)
    h_ref = jnp.maximum(xb @ w1b + b1, 0.0)
    ref = h_ref.astype(jnp.bfloat16).astype(jnp.float32) @ w2b + b2
    assert jnp.allclose(out, ref, atol=2e-2, rtol=2e-2)

    # Loose sanity check against the pure-f32 forward as well.
    # NOTE: matmul inputs are intentionally truncated to bf16 (f32 accumulate),
    # so logits can deviate from a pure-f32 PyTorch forward by ~1e-1 here.
    ref_f32 = jnp.maximum(x @ w1 + b1, 0.0) @ w2 + b2
    assert jnp.allclose(out, ref_f32, atol=1e-1, rtol=1e-1)

    print("KERNEL_OK")
</pallas_src>

<mosaic_0001>
module attributes {stable_mosaic.version = 11 : i64} {
  func.func @mlp_kernel(%arg0: i32, %arg1: memref<128x784xf32, #tpu.memory_space<vmem>>, %arg2: memref<784x128xbf16, #tpu.memory_space<vmem>>, %arg3: memref<1x128xf32, #tpu.memory_space<vmem>>, %arg4: memref<128x10xbf16, #tpu.memory_space<vmem>>, %arg5: memref<1x10xf32, #tpu.memory_space<vmem>>, %arg6: memref<128x10xf32, #tpu.memory_space<vmem>>) attributes {dimension_semantics = [#tpu.dimension_semantics<parallel>], iteration_bounds = array<i64: 2>, scalar_prefetch = 0 : i64, scratch_operands = 0 : i64, tpu.core_type = #tpu.core_type<tc>, window_params = [{transform_indices = @transform_0, window_bounds = array<i64: 128, 784>}, {pipeline_mode = #tpu.pipeline_mode<synchronous>, transform_indices = @transform_1, window_bounds = array<i64: 784, 128>}, {pipeline_mode = #tpu.pipeline_mode<synchronous>, transform_indices = @transform_2, window_bounds = array<i64: 1, 128>}, {pipeline_mode = #tpu.pipeline_mode<synchronous>, transform_indices = @transform_3, window_bounds = array<i64: 128, 10>}, {pipeline_mode = #tpu.pipeline_mode<synchronous>, transform_indices = @transform_4, window_bounds = array<i64: 1, 10>}, {transform_indices = @transform_5, window_bounds = array<i64: 128, 10>}]} {
    %c0 = arith.constant 0 : index
    %c0_0 = arith.constant 0 : index
    %0 = vector.load %arg1[%c0, %c0_0] : memref<128x784xf32, #tpu.memory_space<vmem>>, vector<128x784xf32>
    %1 = arith.truncf %0 : vector<128x784xf32> to vector<128x784xbf16>
    %c0_1 = arith.constant 0 : index
    %c0_2 = arith.constant 0 : index
    %2 = vector.load %arg2[%c0_1, %c0_2] : memref<784x128xbf16, #tpu.memory_space<vmem>>, vector<784x128xbf16>
    %cst = arith.constant dense<0.000000e+00> : vector<128x128xf32>
    %3 = tpu.matmul %1, %2, %cst {dimension_numbers = #tpu.dot_dimension_numbers<[1], [0], [0], [1], [0, 0, 1, 1], [], []>} : vector<128x784xbf16>, vector<784x128xbf16>, vector<128x128xf32> -> vector<128x128xf32>
    %c0_3 = arith.constant 0 : index
    %c0_4 = arith.constant 0 : index
    %4 = vector.load %arg3[%c0_3, %c0_4] : memref<1x128xf32, #tpu.memory_space<vmem>>, vector<1x128xf32>
    %5 = vector.broadcast %4 : vector<1x128xf32> to vector<128x128xf32>
    %6 = arith.addf %3, %5 : vector<128x128xf32>
    %cst_5 = arith.constant 0.000000e+00 : f32
    %7 = vector.broadcast %cst_5 : f32 to vector<128x128xf32>
    %8 = arith.maximumf %6, %7 : vector<128x128xf32>
    %9 = arith.truncf %8 : vector<128x128xf32> to vector<128x128xbf16>
    %c0_6 = arith.constant 0 : index
    %c0_7 = arith.constant 0 : index
    %10 = vector.load %arg4[%c0_6, %c0_7] : memref<128x10xbf16, #tpu.memory_space<vmem>>, vector<128x10xbf16>
    %cst_8 = arith.constant dense<0.000000e+00> : vector<128x10xf32>
    %11 = tpu.matmul %9, %10, %cst_8 {dimension_numbers = #tpu.dot_dimension_numbers<[1], [0], [0], [1], [0, 0, 1, 1], [], []>} : vector<128x128xbf16>, vector<128x10xbf16>, vector<128x10xf32> -> vector<128x10xf32>
    %c0_9 = arith.constant 0 : index
    %c0_10 = arith.constant 0 : index
    %12 = vector.load %arg5[%c0_9, %c0_10] : memref<1x10xf32, #tpu.memory_space<vmem>>, vector<1x10xf32>
    %13 = vector.broadcast %12 : vector<1x10xf32> to vector<128x10xf32>
    %14 = arith.addf %11, %13 : vector<128x10xf32>
    %c0_11 = arith.constant 0 : index
    %c0_12 = arith.constant 0 : index
    %15 = vector.load %arg6[%c0_11, %c0_12] : memref<128x10xf32, #tpu.memory_space<vmem>>, vector<128x10xf32>
    tpu.vector_store %arg6[%c0_11, %c0_12], %14 {strides = array<i32>} : memref<128x10xf32, #tpu.memory_space<vmem>>, vector<128x10xf32>,
    return
  }
  func.func @transform_0(%arg0: i32) -> (i32, i32) {
    %c0_i32 = arith.constant 0 : i32
    %c0_i32_0 = arith.constant 0 : i32
    return %arg0, %c0_i32 : i32, i32
  }
  func.func @transform_1(%arg0: i32) -> (i32, i32) {
    %c0_i32 = arith.constant 0 : i32
    %c0_i32_0 = arith.constant 0 : i32
    %c0_i32_1 = arith.constant 0 : i32
    return %c0_i32, %c0_i32_0 : i32, i32
  }
  func.func @transform_2(%arg0: i32) -> (i32, i32) {
    %c0_i32 = arith.constant 0 : i32
    %c0_i32_0 = arith.constant 0 : i32
    %c0_i32_1 = arith.constant 0 : i32
    return %c0_i32, %c0_i32_0 : i32, i32
  }
  func.func @transform_3(%arg0: i32) -> (i32, i32) {
    %c0_i32 = arith.constant 0 : i32
    %c0_i32_0 = arith.constant 0 : i32
    %c0_i32_1 = arith.constant 0 : i32
    return %c0_i32, %c0_i32_0 : i32, i32
  }
  func.func @transform_4(%arg0: i32) -> (i32, i32) {
    %c0_i32 = arith.constant 0 : i32
    %c0_i32_0 = arith.constant 0 : i32
    %c0_i32_1 = arith.constant 0 : i32
    return %c0_i32, %c0_i32_0 : i32, i32
  }
  func.func @transform_5(%arg0: i32) -> (i32, i32) {
    %c0_i32 = arith.constant 0 : i32
    %c0_i32_0 = arith.constant 0 : i32
    return %arg0, %c0_i32 : i32, i32
  }
}

</mosaic_0001>

<bundles_post_ra>
// kernel: tpu_custom_call.1
= control target key start
LH: loop header
LB: loop body
LE: loop exit
PB: predicated region body
PF: predicated region fallthrough
CT: control target
= control target key end

     0   :  { %s1731_s18 = smov 0   ;;  %s2151_s0 = inlined_call_operand.vmem [shape: f32[256,784], index: 0, kind: input, shape index: {}]   ;;  %s2152_s1 = inlined_call_operand.vmem [shape: bf16[784,128], index: 1, kind: input, shape index: {}]   ;;  %s2153_s2 = inlined_call_operand.vmem [shape: f32[1,128], index: 2, kind: input, shape index: {}]   ;;  %s2154_s3 = inlined_call_operand.vmem [shape: bf16[128,10], index: 3, kind: input, shape index: {}]   ;;  %s2155_s4 = inlined_call_operand.vmem [shape: f32[1,10], index: 4, kind: input, shape index: {}]   ;;  %s2156_s5 = inlined_call_operand.vmem [shape: f32[256,10], index: 5, kind: output, shape index: {}]  }
   0x1 LB: > { %s1378_s19 = sadd.s32 4294967295, %s1699_s18   ;;  %p1382_p0 = scmp.ge.s32.totalorder %s1699_s18, 1  ;;  %s1699_s18 = sphi %s1731_s18, %s15_s18  }
   0x2   : > { %p189_p1 = scmp.lt.s32.totalorder %s1699_s18, 3 }
   0x4   : > { %p190_p2 = pnand %p1382_p0, %p189_p1 }
   0x5   : > { %s1383_s21 = sshll.u32 (!%p190_p2), %s1378_s19, 4 }
   0x6   : > { %193 = sbr.rel (%p190_p2) target bundleno = 574 (0x23e), region = 40  ;;  %p219_p3 = scmp.lt.s32.totalorder (!%p190_p2), %s1383_s21, 31 }
   0xb   : > { %v1632_v0 = vld [vmem:[%s2152_s1 + $0x38] sm:$0xff]  ;;  %v1631_v4 = vld [vmem:[%s2152_s1 + $0x30] sm:$0xff]  ;;  %v1630_v8 = vld [vmem:[%s2152_s1 + $0x28] sm:$0xff]  ;;  %s2158_s21 = smov (!%p219_p3, %s1383_s21), 31  ;;  %vm796_vm0 = vcmask 130048   ;;  %vm1305_vm1 = vcmask 80896  }
   0xc   : > { %v1640_v1 = vld [vmem:[%s2152_s1 + $0x78] sm:$0xff]  ;;  %821 = vmatpush.bf16.msra.mxu0 %v1632_v0  ;;  %v1639_v5 = vld [vmem:[%s2152_s1 + $0x70] sm:$0xff]  ;;  %v1638_v9 = vld [vmem:[%s2152_s1 + $0x68] sm:$0xff]  ;;  %s1682_s16 = smul.u32 56, %s2158_s21 }
   0xd   : > { %v1648_v2 = vld [vmem:[%s2152_s1 + $0xb8] sm:$0xff]  ;;  %870 = vmatpush.bf16.msra.mxu1 %v1640_v1  ;;  %v1647_v6 = vld [vmem:[%s2152_s1 + $0xb0] sm:$0xff]  ;;  %v1646_v10 = vld [vmem:[%s2152_s1 + $0xa8] sm:$0xff] }
   0xe   : > { %v1656_v3 = vld [vmem:[%s2152_s1 + $0xf8] sm:$0xff]  ;;  %919 = vmatpush.bf16.msra.mxu2 %v1648_v2  ;;  %v1655_v7 = vld [vmem:[%s2152_s1 + $0xf0] sm:$0xff]  ;;  %v1654_v11 = vld [vmem:[%s2152_s1 + $0xe8] sm:$0xff]  ;;  %s1823_s19 = scalar_lea.vmem %s2151_s0, %s1682_s16 }
   0xf   : > { %968 = vmatpush.bf16.msra.mxu3 %v1656_v3  ;;  %v1629_v12 = vld [vmem:[%s2152_s1 + $0x20] sm:$0xff]  ;;  %v1628_v16 = vld [vmem:[%s2152_s1 + $0x18] sm:$0xff]  ;;  %v1627_v20 = vld [vmem:[%s2152_s1 + $0x10] sm:$0xff] }
  0x10   : > { %822 = vmatpush.bf16.msra.mxu0 %v1631_v4  ;;  %v1637_v13 = vld [vmem:[%s2152_s1 + $0x60] sm:$0xff]  ;;  %v1636_v17 = vld [vmem:[%s2152_s1 + $0x58] sm:$0xff]  ;;  %v1635_v21 = vld [vmem:[%s2152_s1 + $0x50] sm:$0xff] }
  0x11   : > { %871 = vmatpush.bf16.msra.mxu1 %v1639_v5  ;;  %v1645_v14 = vld [vmem:[%s2152_s1 + $0xa0] sm:$0xff]  ;;  %v1644_v18 = vld [vmem:[%s2152_s1 + $0x98] sm:$0xff]  ;;  %v1643_v22 = vld [vmem:[%s2152_s1 + $0x90] sm:$0xff] }
  0x12   : > { %920 = vmatpush.bf16.msra.mxu2 %v1647_v6  ;;  %v1653_v15 = vld [vmem:[%s2152_s1 + $0xe0] sm:$0xff]  ;;  %v1652_v19 = vld [vmem:[%s2152_s1 + $0xd8] sm:$0xff]  ;;  %v1651_v23 = vld [vmem:[%s2152_s1 + $0xd0] sm:$0xff] }
  0x13   : > { %969 = vmatpush.bf16.msra.mxu3 %v1655_v7  ;;  %v1626_v24 = vld [vmem:[%s2152_s1 + $0x8] sm:$0xff]  ;;  %v1625_v28 = vld [vmem:[%s2152_s1] sm:$0xff]  ;;  %v239_v33 = vld [vmem:[%s1823_s19 + $0x38] sm:$0xff] }
  0x14   : > { %823 = vmatpush.bf16.msra.mxu0 %v1630_v8  ;;  %v1634_v25 = vld [vmem:[%s2152_s1 + $0x48] sm:$0xff]  ;;  %v1633_v29 = vld [vmem:[%s2152_s1 + $0x40] sm:$0xff]  ;;  %v234_v36 = vld [vmem:[%s1823_s19 + $0x10] sm:$0xff] }
  0x15   : > { %872 = vmatpush.bf16.msra.mxu1 %v1638_v9  ;;  %v1642_v26 = vld [vmem:[%s2152_s1 + $0x88] sm:$0xff]  ;;  %v1641_v30 = vld [vmem:[%s2152_s1 + $0x80] sm:$0xff]  ;;  %v235_v38 = vld [vmem:[%s1823_s19 + $0x18] sm:$0xff] }
  0x16   : > { %921 = vmatpush.bf16.msra.mxu2 %v1646_v10  ;;  %v1650_v27 = vld [vmem:[%s2152_s1 + $0xc8] sm:$0xff]  ;;  %v1649_v31 = vld [vmem:[%s2152_s1 + $0xc0] sm:$0xff]  ;;  %v242_v39 = vld [vmem:[%s1823_s19 + $0x50] sm:$0xff] }
  0x17   : > { %970 = vmatpush.bf16.msra.mxu3 %v1654_v11  ;;  %v232_v32 = vld [vmem:[%s1823_s19] sm:$0xff]  ;;  %v233_v34 = vld [vmem:[%s1823_s19 + $0x8] sm:$0xff]  ;;  %v1664_v41 = vld [vmem:[%s2152_s1 + $0x138] sm:$0xff]  ;;  %v347_v45 = vpack.c.bf16 %v242_v39, %v235_v38 }
  0x18   : > { %824 = vmatpush.bf16.msra.mxu0 %v1629_v12  ;;  %v240_v35 = vld [vmem:[%s1823_s19 + $0x40] sm:$0xff]  ;;  %v241_v37 = vld [vmem:[%s1823_s19 + $0x48] sm:$0xff]  ;;  %v344_v42 = vpack.c.bf16 %v239_v33, %v232_v32  ;;  %v1672_v46 = vld [vmem:[%s2152_s1 + $0x178] sm:$0xff] }
  0x19   : > { %873 = vmatpush.bf16.msra.mxu1 %v1637_v13  ;;  %v1673_v40 = vld [vmem:[%s2152_s1 + $0x180] sm:$0xff]  ;;  %v345_v43 = vpack.c.bf16 %v240_v35, %v233_v34  ;;  %v346_v44 = vpack.c.bf16 %v241_v37, %v234_v36  ;;  %v1663_v47 = vld [vmem:[%s2152_s1 + $0x130] sm:$0xff]  ;;  %v1662_v49 = vld [vmem:[%s2152_s1 + $0x128] sm:$0xff] }
  0x1a   : > { %922 = vmatpush.bf16.msra.mxu2 %v1645_v14  ;;  %v1671_v48 = vld [vmem:[%s2152_s1 + $0x170] sm:$0xff]  ;;  %v1670_v50 = vld [vmem:[%s2152_s1 + $0x168] sm:$0xff]  ;;  %v247_v53 = vld [vmem:[%s1823_s19 + $0x78] sm:$0xff] }
  0x1b   : > { %971 = vmatpush.bf16.msra.mxu3 %v1653_v15  ;;  %v246_v51 = vld [vmem:[%s1823_s19 + $0x70] sm:$0xff]  ;;  %v253_v52 = vld [vmem:[%s1823_s19 + $0xa8] sm:$0xff]  ;;  %v248_v55 = vld [vmem:[%s1823_s19 + $0x80] sm:$0xff] }
  0x1c   : > { %825 = vmatpush.bf16.msra.mxu0 %v1628_v16  ;;  %v254_v54 = vld [vmem:[%s1823_s19 + $0xb0] sm:$0xff]  ;;  %v255_v56 = vld [vmem:[%s1823_s19 + $0xb8] sm:$0xff]  ;;  %v249_v57 = vld [vmem:[%s1823_s19 + $0x88] sm:$0xff]  ;;  %v351_v59 = vpack.c.bf16 %v253_v52, %v246_v51 }
  0x1d   : > { %874 = vmatpush.bf16.msra.mxu1 %v1636_v17  ;;  %v256_v58 = vld [vmem:[%s1823_s19 + $0xc0] sm:$0xff]  ;;  %v352_v60 = vpack.c.bf16 %v254_v54, %v247_v53  ;;  %v353_v61 = vpack.c.bf16 %v255_v56, %v248_v55  ;;  %v267_v2 = vld [vmem:[%s1823_s19 + $0x118] sm:$0xff]  ;;  %v261_v3 = vld [vmem:[%s1823_s19 + $0xe8] sm:$0xff] }
  0x1e   : > { %923 = vmatpush.bf16.msra.mxu2 %v1644_v18  ;;  %v354_v62 = vpack.c.bf16 %v256_v58, %v249_v57  ;;  %v1661_v63 = vld [vmem:[%s2152_s1 + $0x120] sm:$0xff]  ;;  %v262_v5 = vld [vmem:[%s1823_s19 + $0xf0] sm:$0xff]  ;;  %v269_v6 = vld [vmem:[%s1823_s19 + $0x128] sm:$0xff] }
  0x1f   : > { %972 = vmatpush.bf16.msra.mxu3 %v1652_v19  ;;  %v1669_v0 = vld [vmem:[%s2152_s1 + $0x160] sm:$0xff]  ;;  %v263_v7 = vld [vmem:[%s1823_s19 + $0xf8] sm:$0xff]  ;;  %v270_v8 = vld [vmem:[%s1823_s19 + $0x130] sm:$0xff]  ;;  %v360_v11 = vpack.c.bf16 %v269_v6, %v262_v5 }
  0x20   : > { %826 = vmatpush.bf16.msra.mxu0 %v1627_v20  ;;  %v260_v1 = vld [vmem:[%s1823_s19 + $0xe0] sm:$0xff]  ;;  %v361_v12 = vpack.c.bf16 %v270_v8, %v263_v7  ;;  %v1660_v13 = vld [vmem:[%s2152_s1 + $0x118] sm:$0xff]  ;;  %v274_v15 = vld [vmem:[%s1823_s19 + $0x150] sm:$0xff] }
  0x21   : > { %875 = vmatpush.bf16.msra.mxu1 %v1635_v21  ;;  %v268_v4 = vld [vmem:[%s1823_s19 + $0x120] sm:$0xff]  ;;  %v358_v9 = vpack.c.bf16 %v267_v2, %v260_v1  ;;  %v1668_v14 = vld [vmem:[%s2152_s1 + $0x158] sm:$0xff]  ;;  %v281_v16 = vld [vmem:[%s1823_s19 + $0x188] sm:$0xff] }
  0x22   : > { %924 = vmatpush.bf16.msra.mxu2 %v1643_v22  ;;  %v359_v10 = vpack.c.bf16 %v268_v4, %v261_v3  ;;  %v275_v17 = vld [vmem:[%s1823_s19 + $0x158] sm:$0xff]  ;;  %v282_v18 = vld [vmem:[%s1823_s19 + $0x190] sm:$0xff]  ;;  %v276_v19 = vld [vmem:[%s1823_s19 + $0x160] sm:$0xff] }
  0x23   : > { %973 = vmatpush.bf16.msra.mxu3 %v1651_v23  ;;  %v283_v20 = vld [vmem:[%s1823_s19 + $0x198] sm:$0xff]  ;;  %v277_v21 = vld [vmem:[%s1823_s19 + $0x168] sm:$0xff]  ;;  %v284_v22 = vld [vmem:[%s1823_s19 + $0x1a0] sm:$0xff]  ;;  %v365_v23 = vpack.c.bf16 %v281_v16, %v274_v15 }
  0x24   : > { %827 = vmatpush.bf16.msra.mxu0 %v1626_v24  ;;  %v366_v24 = vpack.c.bf16 %v282_v18, %v275_v17  ;;  %v296_v32 = vld [vmem:[%s1823_s19 + $0x200] sm:$0xff]  ;;  %v290_v33 = vld [vmem:[%s1823_s19 + $0x1d0] sm:$0xff]  ;;  %v297_v34 = vld [vmem:[%s1823_s19 + $0x208] sm:$0xff] }
  0x25   : > { %876 = vmatpush.bf16.msra.mxu1 %v1634_v25  ;;  %v367_v25 = vpack.c.bf16 %v283_v20, %v276_v19  ;;  %v291_v35 = vld [vmem:[%s1823_s19 + $0x1d8] sm:$0xff]  ;;  %v298_v36 = vld [vmem:[%s1823_s19 + $0x210] sm:$0xff]  ;;  %v374_v39 = vpack.c.bf16 %v297_v34, %v290_v33  ;;  %v1657_v55 = vld [vmem:[%s2152_s1 + $0x100] sm:$0xff] }
  0x26   : > { %925 = vmatpush.bf16.msra.mxu2 %v1642_v26  ;;  %v368_v26 = vpack.c.bf16 %v284_v22, %v277_v21  ;;  %v1665_v56 = vld [vmem:[%s2152_s1 + $0x140] sm:$0xff]  ;;  %v323_v58 = vld [vmem:[%s1823_s19 + $0x2d8] sm:$0xff]  ;;  %v330_v5 = vld [vmem:[%s1823_s19 + $0x310] sm:$0xff] }
  0x27   : > { %974 = vmatpush.bf16.msra.mxu3 %v1650_v27  ;;  %v1659_v27 = vld [vmem:[%s2152_s1 + $0x110] sm:$0xff]  ;;  %v316_v57 = vld [vmem:[%s1823_s19 + $0x2a0] sm:$0xff]  ;;  %v337_v6 = vld [vmem:[%s1823_s19 + $0x348] sm:$0xff] }
  0x28   : > { %828 = vmatpush.bf16.msra.mxu0 %v1625_v28  ;;  %v1667_v28 = vld [vmem:[%s2152_s1 + $0x150] sm:$0xff]  ;;  %v386_v1 = vpack.c.bf16 %v323_v58, %v316_v57  ;;  %v331_v7 = vld [vmem:[%s1823_s19 + $0x318] sm:$0xff]  ;;  %v236_v18 = vld [vmem:[%s1823_s19 + $0x20] sm:$0xff] }
  0x29   : > { %877 = vmatpush.bf16.msra.mxu1 %v1633_v29  ;;  %v288_v29 = vld [vmem:[%s1823_s19 + $0x1c0] sm:$0xff]  ;;  %v338_v8 = vld [vmem:[%s1823_s19 + $0x350] sm:$0xff]  ;;  %v1681_v17 = vld [vmem:[%s2154_s3 + $0x38] sm:$0xff] }
  0x2a   : > { %926 = vmatpush.bf16.msra.mxu2 %v1641_v30  ;;  %v295_v30 = vld [vmem:[%s1823_s19 + $0x1f8] sm:$0xff]  ;;  %v237_v20 = vld [vmem:[%s1823_s19 + $0x28] sm:$0xff]  ;;  %v244_v21 = vld [vmem:[%s1823_s19 + $0x60] sm:$0xff] }
  0x2b   : > { %975 = vmatpush.bf16.msra.mxu3 %v1649_v31  ;;  %829 = vmatmul.bf16.vlgmr.msra.gmra.mxu0 %v344_v42  ;;  %v289_v31 = vld [vmem:[%s1823_s19 + $0x1c8] sm:$0xff]  ;;  %v372_v37 = vpack.c.bf16 %v295_v30, %v288_v29  ;;  %v243_v19 = vld [vmem:[%s1823_s19 + $0x58] sm:$0xff]  ;;  %v1968_v22 = vld [vmem:[%s2153_s2] ss:$0 sm:$0xff] }
  0x2c   : > { %1017 = vmatpush.bf16.msrb.mxu0 %v1664_v41  ;;  %878 = vmatmul.bf16.vlgmr.msra.gmra.mxu1 %v345_v43  ;;  %v373_v38 = vpack.c.bf16 %v296_v32, %v289_v31  ;;  %v1658_v41 = vld [vmem:[%s2152_s1 + $0x108] sm:$0xff]  ;;  %v302_v43 = vld [vmem:[%s1823_s19 + $0x230] sm:$0xff] }
  0x2d   : > { %927 = vmatmul.bf16.vlgmr.msra.gmra.mxu2 %v346_v44  ;;  %1066 = vmatpush.bf16.msrb.mxu1 %v1672_v46  ;;  %v1666_v42 = vld [vmem:[%s2152_s1 + $0x148] sm:$0xff]  ;;  %v310_v46 = vld [vmem:[%s1823_s19 + $0x270] sm:$0xff] }
  0x2e   : > { %1122 = vmatpush.bf16.msrb.mxu2 %v1673_v40  ;;  %976 = vmatmul.bf16.vlgmr.msra.gmra.mxu3 %v347_v45  ;;  %v375_v40 = vpack.c.bf16 %v298_v36, %v291_v35  ;;  %v309_v44 = vld [vmem:[%s1823_s19 + $0x268] sm:$0xff]  ;;  %v303_v45 = vld [vmem:[%s1823_s19 + $0x238] sm:$0xff]  ;;  %v1680_v32 = vld [vmem:[%s2154_s3 + $0x30] sm:$0xff] }
  0x2f   : > { %v379_v51 = vpack.c.bf16 %v309_v44, %v302_v43  ;;  %v380_v52 = vpack.c.bf16 %v310_v46, %v303_v45  ;;  %1256 = vmatpush.bf16.msrb.mxu3 %v1681_v17  ;;  %v252_v43 = vld [vmem:[%s1823_s19 + $0xa0] sm:$0xff]  ;;  %v259_v44 = vld [vmem:[%s1823_s19 + $0xd8] sm:$0xff] }
  0x30   : > { %1018 = vmatpush.bf16.msrb.mxu0 %v1663_v47  ;;  %v304_v47 = vld [vmem:[%s1823_s19 + $0x240] sm:$0xff] }
  0x31   : > { %1067 = vmatpush.bf16.msrb.mxu1 %v1671_v48  ;;  %v311_v48 = vld [vmem:[%s1823_s19 + $0x278] sm:$0xff] }
  0x32   : > { %v381_v53 = vpack.c.bf16 %v311_v48, %v304_v47 }
  0x33   : > { %1257 = vmatpush.bf16.msrb.mxu3 %v1680_v32 }
  0x34   : > { %1019 = vmatpush.bf16.msrb.mxu0 %v1662_v49  ;;  %v305_v49 = vld [vmem:[%s1823_s19 + $0x248] sm:$0xff] }
  0x35   : > { %1068 = vmatpush.bf16.msrb.mxu1 %v1670_v50  ;;  %v312_v50 = vld [vmem:[%s1823_s19 + $0x280] sm:$0xff] }
  0x36   : > { %v382_v54 = vpack.c.bf16 %v312_v50, %v305_v49 }
  0x38   : > { %1020 = vmatpush.bf16.msrb.mxu0 %v1661_v63  ;;  %v319_v63 = vld [vmem:[%s1823_s19 + $0x2b8] sm:$0xff] }
  0x39   : > { %1069 = vmatpush.bf16.msrb.mxu1 %v1669_v0  ;;  %v326_v0 = vld [vmem:[%s1823_s19 + $0x2f0] sm:$0xff] }
  0x3a   : > { %v389_v4 = vpack.c.bf16 %v326_v0, %v319_v63  ;;  %v265_v63 = vld [vmem:[%s1823_s19 + $0x108] sm:$0xff]  ;;  %v272_v0 = vld [vmem:[%s1823_s19 + $0x140] sm:$0xff] }
  0x3b   : > { %834 = vmatmul.bf16.gmra.mxu0 %v351_v59  ;;  %v317_v59 = vld [vmem:[%s1823_s19 + $0x2a8] sm:$0xff] }
  0x3c   : > { %883 = vmatmul.bf16.gmra.mxu1 %v352_v60  ;;  %1021 = vmatpush.bf16.msrb.mxu0 %v1660_v13  ;;  %v324_v60 = vld [vmem:[%s1823_s19 + $0x2e0] sm:$0xff]  ;;  %v393_v13 = vpack.c.bf16 %v337_v6, %v330_v5  ;;  %v363_v5 = vpack.c.bf16 %v272_v0, %v265_v63 }
  0x3d   : > { %932 = vmatmul.bf16.gmra.mxu2 %v353_v61  ;;  %1070 = vmatpush.bf16.msrb.mxu1 %v1668_v14  ;;  %v318_v61 = vld [vmem:[%s1823_s19 + $0x2b0] sm:$0xff]  ;;  %v387_v2 = vpack.c.bf16 %v324_v60, %v317_v59  ;;  %v394_v14 = vpack.c.bf16 %v338_v8, %v331_v7 }
  0x3e   : > { %981 = vmatmul.bf16.gmra.mxu3 %v354_v62  ;;  %v325_v62 = vld [vmem:[%s1823_s19 + $0x2e8] sm:$0xff] }
  0x3f   : > { %v388_v3 = vpack.c.bf16 %v325_v62, %v318_v61  ;;  %v264_v61 = vld [vmem:[%s1823_s19 + $0x100] sm:$0xff]  ;;  %v271_v62 = vld [vmem:[%s1823_s19 + $0x138] sm:$0xff] }
  0x40   : > { %1022 = vmatpush.bf16.msrb.mxu0 %v1659_v27 }
  0x41   : > { %1071 = vmatpush.bf16.msrb.mxu1 %v1667_v28 }
  0x44   : > { %1023 = vmatpush.bf16.msrb.mxu0 %v1658_v41  ;;  %v251_v41 = vld [vmem:[%s1823_s19 + $0x98] sm:$0xff] }
  0x45   : > { %1072 = vmatpush.bf16.msrb.mxu1 %v1666_v42  ;;  %v258_v42 = vld [vmem:[%s1823_s19 + $0xd0] sm:$0xff] }
  0x46   : > { %v356_v47 = vpack.c.bf16 %v258_v42, %v251_v41 }
  0x48   : > { %1024 = vmatpush.bf16.msrb.mxu0 %v1657_v55 }
  0x49   : > { %1073 = vmatpush.bf16.msrb.mxu1 %v1665_v56 }
  0x4b   : > { %839 = vmatmul.bf16.gmra.mxu0 %v358_v9  ;;  %v332_v9 = vld [vmem:[%s1823_s19 + $0x320] sm:$0xff] }
  0x4c   : > { %888 = vmatmul.bf16.gmra.mxu1 %v359_v10  ;;  %v339_v10 = vld [vmem:[%s1823_s19 + $0x358] sm:$0xff] }
  0x4d   : > { %937 = vmatmul.bf16.gmra.mxu2 %v360_v11  ;;  %v333_v11 = vld [vmem:[%s1823_s19 + $0x328] sm:$0xff]  ;;  %v395_v15 = vpack.c.bf16 %v339_v10, %v332_v9 }
  0x4e   : > { %986 = vmatmul.bf16.gmra.mxu3 %v361_v12  ;;  %v340_v12 = vld [vmem:[%s1823_s19 + $0x360] sm:$0xff] }
  0x4f   : > { %v396_v16 = vpack.c.bf16 %v340_v12, %v333_v11  ;;  %v1678_v12 = vld [vmem:[%s2154_s3 + $0x20] sm:$0xff] }
  0x5b   : > { %844 = vmatmul.bf16.gmra.mxu0 %v365_v23  ;;  %v238_v23 = vld [vmem:[%s1823_s19 + $0x30] sm:$0xff] }
  0x5c   : > { %893 = vmatmul.bf16.gmra.mxu1 %v366_v24  ;;  %v245_v24 = vld [vmem:[%s1823_s19 + $0x68] sm:$0xff] }
  0x5d   : > { %942 = vmatmul.bf16.gmra.mxu2 %v367_v25  ;;  %v348_v25 = vpack.c.bf16 %v243_v19, %v236_v18  ;;  %v350_v29 = vpack.c.bf16 %v245_v24, %v238_v23  ;;  %v278_v19 = vld [vmem:[%s1823_s19 + $0x170] sm:$0xff]  ;;  %v280_v24 = vld [vmem:[%s1823_s19 + $0x180] sm:$0xff] }
  0x5e   : > { %991 = vmatmul.bf16.gmra.mxu3 %v368_v26  ;;  %v349_v26 = vpack.c.bf16 %v244_v21, %v237_v20  ;;  %v285_v20 = vld [vmem:[%s1823_s19 + $0x1a8] sm:$0xff]  ;;  %v279_v21 = vld [vmem:[%s1823_s19 + $0x178] sm:$0xff]  ;;  %v286_v23 = vld [vmem:[%s1823_s19 + $0x1b0] sm:$0xff] }
  0x6b   : > { %849 = vmatmul.bf16.gmra.mxu0 %v372_v37 }
  0x6c   : > { %898 = vmatmul.bf16.gmra.mxu1 %v373_v38 }
  0x6d   : > { %947 = vmatmul.bf16.gmra.mxu2 %v374_v39  ;;  %v250_v39 = vld [vmem:[%s1823_s19 + $0x90] sm:$0xff] }
  0x6e   : > { %996 = vmatmul.bf16.gmra.mxu3 %v375_v40  ;;  %v257_v40 = vld [vmem:[%s1823_s19 + $0xc8] sm:$0xff] }
  0x6f   : > { %v355_v46 = vpack.c.bf16 %v257_v40, %v250_v39 }
  0x7b   : > { %854 = vmatmul.bf16.gmra.mxu0 %v379_v51  ;;  %v357_v51 = vpack.c.bf16 %v259_v44, %v252_v43  ;;  %v292_v43 = vld [vmem:[%s1823_s19 + $0x1e0] sm:$0xff]  ;;  %v299_v44 = vld [vmem:[%s1823_s19 + $0x218] sm:$0xff] }
  0x7c   : > { %903 = vmatmul.bf16.gmra.mxu1 %v380_v52 }
  0x7d   : > { %952 = vmatmul.bf16.gmra.mxu2 %v381_v53 }
  0x7e   : > { %1001 = vmatmul.bf16.gmra.mxu3 %v382_v54  ;;  %v1679_v54 = vld [vmem:[%s2154_s3 + $0x28] sm:$0xff] }
  0x7f   : > { %1258 = vmatpush.bf16.msrb.mxu3 %v1679_v54 }
  0x83   : > { %1259 = vmatpush.bf16.msrb.mxu3 %v1678_v12 }
  0x8b   : > { %859 = vmatmul.bf16.gmra.mxu0 %v386_v1  ;;  %v266_v1 = vld [vmem:[%s1823_s19 + $0x110] sm:$0xff] }
  0x8c   : > { %908 = vmatmul.bf16.gmra.mxu1 %v387_v2  ;;  %v273_v2 = vld [vmem:[%s1823_s19 + $0x148] sm:$0xff] }
  0x8d   : > { %957 = vmatmul.bf16.gmra.mxu2 %v388_v3  ;;  %v364_v9 = vpack.c.bf16 %v273_v2, %v266_v1 }
  0x8e   : > { %1006 = vmatmul.bf16.gmra.mxu3 %v389_v4  ;;  %v362_v4 = vpack.c.bf16 %v271_v62, %v264_v61 }
  0x9b   : > { %864 = vmatmul.bf16.gmra.mxu0 %v393_v13 }
  0x9c   : > { %913 = vmatmul.bf16.gmra.mxu1 %v394_v14 }
  0x9d   : > { %962 = vmatmul.bf16.gmra.mxu2 %v395_v15 }
  0x9e   : > { %1011 = vmatmul.bf16.gmra.mxu3 %v396_v16 }
  0xa8   : > { %v830_v27 = vpop.f32.mrf.mxu0 }
  0xa9   : > { %v879_v28 = vpop.f32.mrf.mxu1  ;;  %v831_v30 = vadd.f32 %v1968_v22, %v830_v27  ;;  %v369_v27 = vpack.c.bf16 %v285_v20, %v278_v19  ;;  %v1675_v20 = vld [vmem:[%s2154_s3 + $0x8] sm:$0xff] }
  0xab   : > { %v880_v31 = vadd.f32 %v879_v28, %v831_v30  ;;  %1025 = vmatmul.bf16.vlgmr.msrb.gmra.mxu0 %v348_v25  ;;  %v287_v25 = vld [vmem:[%s1823_s19 + $0x1b8] sm:$0xff]  ;;  %v370_v28 = vpack.c.bf16 %v286_v23, %v279_v21 }
  0xac   : > { %1074 = vmatmul.bf16.vlgmr.msrb.gmra.mxu1 %v349_v26  ;;  %v371_v32 = vpack.c.bf16 %v287_v25, %v280_v24 }
  0xad   : > { %1583 = vmatmul.msk.bf16.vlgmr.msrb.gmra.mxu2 %vm796_vm0, %v350_v29 }
  0xb0   : > { %v928_v33 = vpop.f32.mrf.mxu2  ;;  %v832_v35 = vpop.f32.mrf.mxu0 }
  0xb1   : > { %v1977_v34 = vadd.f32 %v928_v33, %v880_v31  ;;  %v881_v36 = vpop.f32.mrf.mxu1  ;;  %v833_v37 = vadd.f32 %v1968_v22, %v832_v35 }
  0xb3   : > { %v882_v38 = vadd.f32 %v881_v36, %v833_v37  ;;  %v1677_v36 = vld [vmem:[%s2154_s3 + $0x18] sm:$0xff] }
  0xb4   : > { %1260 = vmatpush.bf16.msrb.mxu3 %v1677_v36  ;;  %v977_v36 = vpop.f32.mrf.mxu3 }
  0xb8   : > { %v930_v45 = vpop.f32.mrf.mxu2  ;;  %v835_v49 = vpop.f32.mrf.mxu0 }
  0xb9   : > { %v1986_v48 = vadd.f32 %v930_v45, %v882_v38  ;;  %v884_v50 = vpop.f32.mrf.mxu1  ;;  %v836_v52 = vadd.f32 %v1968_v22, %v835_v49  ;;  %v293_v45 = vld [vmem:[%s1823_s19 + $0x1e8] sm:$0xff] }
  0xba   : > { %v301_v49 = vld [vmem:[%s1823_s19 + $0x228] sm:$0xff] }
  0xbb   : > { %v885_v53 = vadd.f32 %v884_v50, %v836_v52  ;;  %1030 = vmatmul.bf16.gmra.mxu0 %v355_v46  ;;  %v300_v46 = vld [vmem:[%s1823_s19 + $0x220] sm:$0xff] }
  0xbc   : > { %1079 = vmatmul.bf16.gmra.mxu1 %v356_v47  ;;  %v294_v47 = vld [vmem:[%s1823_s19 + $0x1f0] sm:$0xff]  ;;  %v377_v52 = vpack.c.bf16 %v300_v46, %v293_v45 }
  0xbd   : > { %1584 = vmatmul.msk.bf16.gmra.mxu2 %vm796_vm0, %v357_v51  ;;  %v376_v51 = vpack.c.bf16 %v299_v44, %v292_v43 }
  0xc0   : > { %v933_v55 = vpop.f32.mrf.mxu2  ;;  %v837_v57 = vpop.f32.mrf.mxu0 }
  0xc1   : > { %v1993_v56 = vadd.f32 %v933_v55, %v885_v53  ;;  %v886_v58 = vpop.f32.mrf.mxu1  ;;  %v838_v59 = vadd.f32 %v1968_v22, %v837_v57  ;;  %v378_v57 = vpack.c.bf16 %v301_v49, %v294_v47  ;;  %v1674_v47 = vld [vmem:[%s2154_s3] sm:$0xff] }
  0xc3   : > { %v887_v60 = vadd.f32 %v886_v58, %v838_v59 }
  0xc8   : > { %v935_v3 = vpop.f32.mrf.mxu2  ;;  %v840_v7 = vpop.f32.mrf.mxu0 }
  0xc9   : > { %v2002_v6 = vadd.f32 %v935_v3, %v887_v60  ;;  %v889_v8 = vpop.f32.mrf.mxu1  ;;  %v841_v10 = vadd.f32 %v1968_v22, %v840_v7  ;;  %v1676_v60 = vld [vmem:[%s2154_s3 + $0x10] sm:$0xff] }
  0xca   : > { %1261 = vmatpush.bf16.msrb.mxu3 %v1676_v60  ;;  %v306_v3 = vld [vmem:[%s1823_s19 + $0x250] sm:$0xff]  ;;  %v335_v60 = vld [vmem:[%s1823_s19 + $0x338] sm:$0xff] }
  0xcb   : > { %v890_v11 = vadd.f32 %v889_v8, %v841_v10  ;;  %1035 = vmatmul.bf16.gmra.mxu0 %v362_v4  ;;  %v313_v4 = vld [vmem:[%s1823_s19 + $0x288] sm:$0xff]  ;;  %v314_v7 = vld [vmem:[%s1823_s19 + $0x290] sm:$0xff]  ;;  %v308_v8 = vld [vmem:[%s1823_s19 + $0x260] sm:$0xff] }
  0xcc   : > { %1084 = vmatmul.bf16.gmra.mxu1 %v363_v5  ;;  %v307_v5 = vld [vmem:[%s1823_s19 + $0x258] sm:$0xff] }
  0xcd   : > { %1585 = vmatmul.msk.bf16.gmra.mxu2 %vm796_vm0, %v364_v9  ;;  %v315_v9 = vld [vmem:[%s1823_s19 + $0x298] sm:$0xff]  ;;  %v384_v12 = vpack.c.bf16 %v314_v7, %v307_v5 }
  0xce   : > { %1262 = vmatpush.bf16.msrb.mxu3 %v1675_v20 }
  0xd0   : > { %v938_v13 = vpop.f32.mrf.mxu2  ;;  %v842_v15 = vpop.f32.mrf.mxu0 }
  0xd1   : > { %v2009_v14 = vadd.f32 %v938_v13, %v890_v11  ;;  %v891_v16 = vpop.f32.mrf.mxu1  ;;  %v843_v17 = vadd.f32 %v1968_v22, %v842_v15  ;;  %v383_v11 = vpack.c.bf16 %v313_v4, %v306_v3 }
  0xd2   : > { %1263 = vmatpush.bf16.msrb.mxu3 %v1674_v47 }
  0xd3   : > { %v892_v18 = vadd.f32 %v891_v16, %v843_v17  ;;  %v385_v17 = vpack.c.bf16 %v315_v9, %v308_v8 }
  0xd8   : > { %v940_v26 = vpop.f32.mrf.mxu2  ;;  %v845_v30 = vpop.f32.mrf.mxu0 }
  0xd9   : > { %v2018_v29 = vadd.f32 %v940_v26, %v892_v18  ;;  %v894_v31 = vpop.f32.mrf.mxu1  ;;  %v846_v33 = vadd.f32 %v1968_v22, %v845_v30  ;;  %v327_v30 = vld [vmem:[%s1823_s19 + $0x2f8] sm:$0xff] }
  0xdb   : > { %v895_v35 = vadd.f32 %v894_v31, %v846_v33  ;;  %1040 = vmatmul.bf16.gmra.mxu0 %v369_v27  ;;  %v321_v31 = vld [vmem:[%s1823_s19 + $0x2c8] sm:$0xff]  ;;  %v322_v33 = vld [vmem:[%s1823_s19 + $0x2d0] sm:$0xff] }
  0xdc   : > { %1089 = vmatmul.bf16.gmra.mxu1 %v370_v28  ;;  %v320_v28 = vld [vmem:[%s1823_s19 + $0x2c0] sm:$0xff] }
  0xdd   : > { %1586 = vmatmul.msk.bf16.gmra.mxu2 %vm796_vm0, %v371_v32  ;;  %v328_v32 = vld [vmem:[%s1823_s19 + $0x300] sm:$0xff] }
  0xe0   : > { %v943_v37 = vpop.f32.mrf.mxu2  ;;  %v847_v39 = vpop.f32.mrf.mxu0 }
  0xe1   : > { %v2025_v38 = vadd.f32 %v943_v37, %v895_v35  ;;  %v896_v40 = vpop.f32.mrf.mxu1  ;;  %v848_v41 = vadd.f32 %v1968_v22, %v847_v39  ;;  %v329_v35 = vld [vmem:[%s1823_s19 + $0x308] sm:$0xff]  ;;  %v390_v39 = vpack.c.bf16 %v327_v30, %v320_v28 }
  0xe2   : > { %v392_v44 = vpack.c.bf16 %v329_v35, %v322_v33 }
  0xe3   : > { %v897_v42 = vadd.f32 %v896_v40, %v848_v41  ;;  %v391_v40 = vpack.c.bf16 %v328_v32, %v321_v31 }
  0xe8   : > { %v945_v50 = vpop.f32.mrf.mxu2  ;;  %v850_v54 = vpop.f32.mrf.mxu0 }
  0xe9   : > { %v2034_v53 = vadd.f32 %v945_v50, %v897_v42  ;;  %v899_v55 = vpop.f32.mrf.mxu1  ;;  %v851_v58 = vadd.f32 %v1968_v22, %v850_v54  ;;  %v979_v54 = vpop.f32.mrf.mxu3 }
  0xea   : > { %v980_v31 = vadd.f32 %v979_v54, %v1986_v48 }
  0xeb   : > { %v900_v59 = vadd.f32 %v899_v55, %v851_v58  ;;  %1045 = vmatmul.bf16.gmra.mxu0 %v376_v51  ;;  %v334_v58 = vld [vmem:[%s1823_s19 + $0x330] sm:$0xff] }
  0xec   : > { %1094 = vmatmul.bf16.gmra.mxu1 %v377_v52 }
  0xed   : > { %1587 = vmatmul.msk.bf16.gmra.mxu2 %vm796_vm0, %v378_v57 }
  0xf0   : > { %v948_v61 = vpop.f32.mrf.mxu2  ;;  %v852_v63 = vpop.f32.mrf.mxu0 }
  0xf1   : > { %v2041_v62 = vadd.f32 %v948_v61, %v900_v59  ;;  %v901_v0 = vpop.f32.mrf.mxu1  ;;  %v853_v1 = vadd.f32 %v1968_v22, %v852_v63  ;;  %v341_v59 = vld [vmem:[%s1823_s19 + $0x368] sm:$0xff]  ;;  %v342_v61 = vld [vmem:[%s1823_s19 + $0x370] sm:$0xff]  ;;  %v336_v63 = vld [vmem:[%s1823_s19 + $0x340] sm:$0xff] }
  0xf2   : > { %v398_v3 = vpack.c.bf16 %v342_v61, %v335_v60 }
  0xf3   : > { %v902_v2 = vadd.f32 %v901_v0, %v853_v1  ;;  %v343_v0 = vld [vmem:[%s1823_s19 + $0x378] sm:$0xff]  ;;  %s1386_s19 = sshll.u32 %s2158_s21, 3 }
  0xf4   : > { %v399_v8 = vpack.c.bf16 %v343_v0, %v336_v63  ;;  %s2114_s7 = scalar_lea.vmem %s2156_s5, %s1386_s19 }
  0xf8   : > { %v950_v10 = vpop.f32.mrf.mxu2  ;;  %v855_v15 = vpop.f32.mrf.mxu0 }
  0xf9   : > { %v2050_v13 = vadd.f32 %v950_v10, %v902_v2  ;;  %v904_v16 = vpop.f32.mrf.mxu1  ;;  %v856_v18 = vadd.f32 %v1968_v22, %v855_v15  ;;  %v397_v2 = vpack.c.bf16 %v341_v59, %v334_v58  ;;  %v982_v10 = vpop.f32.mrf.mxu3 }
  0xfb   : > { %v905_v19 = vadd.f32 %v904_v16, %v856_v18  ;;  %1050 = vmatmul.bf16.gmra.mxu0 %v383_v11 }
  0xfc   : > { %1099 = vmatmul.bf16.gmra.mxu1 %v384_v12 }
  0xfd   : > { %1588 = vmatmul.msk.bf16.gmra.mxu2 %vm796_vm0, %v385_v17 }
 0x100   : > { %v953_v21 = vpop.f32.mrf.mxu2  ;;  %v857_v24 = vpop.f32.mrf.mxu0 }
 0x101   : > { %v2057_v23 = vadd.f32 %v953_v21, %v905_v19  ;;  %v906_v25 = vpop.f32.mrf.mxu1  ;;  %v858_v26 = vadd.f32 %v1968_v22, %v857_v24  ;;  %v984_v20 = vpop.f32.mrf.mxu3 }
 0x102   : > { %v985_v48 = vadd.f32 %v984_v20, %v2002_v6 }
 0x103   : > { %v907_v27 = vadd.f32 %v906_v25, %v858_v26 }
 0x108   : > { %v955_v37 = vpop.f32.mrf.mxu2  ;;  %v860_v42 = vpop.f32.mrf.mxu0 }
 0x109   : > { %v2066_v41 = vadd.f32 %v955_v37, %v907_v27  ;;  %v909_v43 = vpop.f32.mrf.mxu1  ;;  %v861_v45 = vadd.f32 %v1968_v22, %v860_v42  ;;  %v978_v27 = vadd.f32 %v977_v36, %v1977_v34  ;;  %v987_v28 = vpop.f32.mrf.mxu3  ;;  %v983_v34 = vadd.f32 %v982_v10, %v1993_v56 }
 0x10b   : > { %v910_v46 = vadd.f32 %v909_v43, %v861_v45  ;;  %1055 = vmatmul.bf16.gmra.mxu0 %v390_v39 }
 0x10c   : > { %1104 = vmatmul.bf16.gmra.mxu1 %v391_v40 }
 0x10d   : > { %1589 = vmatmul.msk.bf16.gmra.mxu2 %vm796_vm0, %v392_v44 }
 0x110   : > { %v958_v49 = vpop.f32.mrf.mxu2  ;;  %v862_v51 = vpop.f32.mrf.mxu0 }
 0x111   : > { %v2073_v50 = vadd.f32 %v958_v49, %v910_v46  ;;  %v911_v52 = vpop.f32.mrf.mxu1  ;;  %v863_v55 = vadd.f32 %v1968_v22, %v862_v51  ;;  %v989_v46 = vpop.f32.mrf.mxu3 }
 0x113   : > { %v912_v57 = vadd.f32 %v911_v52, %v863_v55 }
 0x118   : > { %v960_v1 = vpop.f32.mrf.mxu2  ;;  %v865_v5 = vpop.f32.mrf.mxu0 }
 0x119   : > { %v2082_v4 = vadd.f32 %v960_v1, %v912_v57  ;;  %v914_v7 = vpop.f32.mrf.mxu1  ;;  %v866_v9 = vadd.f32 %v1968_v22, %v865_v5  ;;  %v992_v58 = vpop.f32.mrf.mxu3 }
 0x11b   : > { %v915_v11 = vadd.f32 %v914_v7, %v866_v9  ;;  %1060 = vmatmul.bf16.gmra.mxu0 %v397_v2  ;;  %v990_v9 = vadd.f32 %v989_v46, %v2018_v29 }
 0x11c   : > { %1109 = vmatmul.bf16.gmra.mxu1 %v398_v3 }
 0x11d   : > { %1590 = vmatmul.msk.bf16.gmra.mxu2 %vm796_vm0, %v399_v8  ;;  %v988_v8 = vadd.f32 %v987_v28, %v2009_v14  ;;  %v993_v14 = vadd.f32 %v992_v58, %v2025_v38 }
 0x120   : > { %v963_v12 = vpop.f32.mrf.mxu2  ;;  %v867_v16 = vpop.f32.mrf.mxu0 }
 0x121   : > { %v2086_v15 = vadd.f32 %v963_v12, %v915_v11  ;;  %v916_v17 = vpop.f32.mrf.mxu1  ;;  %v868_v18 = vadd.f32 %v1968_v22, %v867_v16  ;;  %v994_v56 = vpop.f32.mrf.mxu3 }
 0x122   : > { %v995_v29 = vadd.f32 %v994_v56, %v2034_v53 }
 0x123   : > { %v917_v19 = vadd.f32 %v916_v17, %v868_v18 }
 0x128   : > { %v965_v21 = vpop.f32.mrf.mxu2  ;;  %v1026_v25 = vpop.f32.mrf.mxu0 }
 0x129   : > { %v2089_v24 = vadd.f32 %v965_v21, %v917_v19  ;;  %v1075_v26 = vpop.f32.mrf.mxu1  ;;  %v1027_v32 = vadd.f32 %v1026_v25, %v978_v27  ;;  %v997_v20 = vpop.f32.mrf.mxu3 }
 0x12b   : > { %v1076_v39 = vadd.f32 %v1075_v26, %v1027_v32 }
 0x130   : > { %v1124_v30 = vpop.f32.mrf.mxu2  ;;  %v1028_v33 = vpop.f32.mrf.mxu0 }
 0x131   : > { %v1077_v35 = vpop.f32.mrf.mxu1  ;;  %v1029_v37 = vadd.f32 %v1028_v33, %v980_v31  ;;  %v1125_v40 = vadd.f32 %v1124_v30, %v1076_v39  ;;  %v999_v39 = vpop.f32.mrf.mxu3 }
 0x133   : > { %v1078_v22 = vadd.f32 %v1077_v35, %v1029_v37  ;;  %v1164_v47 = vmax.f32 %v1125_v40, 0.0 }
 0x138   : > { %v1126_v42 = vpop.f32.mrf.mxu2  ;;  %v1031_v44 = vpop.f32.mrf.mxu0 }
 0x139   : > { %v1127_v43 = vadd.f32 %v1126_v42, %v1078_v22  ;;  %v1080_v45 = vpop.f32.mrf.mxu1  ;;  %v1032_v52 = vadd.f32 %v1031_v44, %v983_v34  ;;  %v1002_v34 = vpop.f32.mrf.mxu3 }
 0x13b   : > { %v1165_v49 = vmax.f32 %v1127_v43, 0.0  ;;  %v1081_v59 = vadd.f32 %v1080_v45, %v1032_v52 }
 0x13d   : > { %v1180_v51 = vpack.c.bf16 %v1165_v49, %v1164_v47 }
 0x13f   : > { %1264 = vmatmul.bf16.vlgmr.msrb.gmra.mxu3 %v1180_v51 }
 0x140   : > { %v1129_v36 = vpop.f32.mrf.mxu2  ;;  %v1033_v54 = vpop.f32.mrf.mxu0 }
 0x141   : > { %v1082_v55 = vpop.f32.mrf.mxu1  ;;  %v1034_v57 = vadd.f32 %v1033_v54, %v985_v48  ;;  %v1130_v60 = vadd.f32 %v1129_v36, %v1081_v59  ;;  %v998_v36 = vadd.f32 %v997_v20, %v2041_v62  ;;  %v1000_v48 = vadd.f32 %v999_v39, %v2050_v13  ;;  %v1004_v59 = vpop.f32.mrf.mxu3 }
 0x142   : > { %v1003_v62 = vadd.f32 %v1002_v34, %v2057_v23 }
 0x143   : > { %v1083_v61 = vadd.f32 %v1082_v55, %v1034_v57  ;;  %v1166_v3 = vmax.f32 %v1130_v60, 0.0 }
 0x148   : > { %v1131_v63 = vpop.f32.mrf.mxu2  ;;  %v1036_v1 = vpop.f32.mrf.mxu0 }
 0x149   : > { %v1132_v0 = vadd.f32 %v1131_v63, %v1083_v61  ;;  %v1085_v2 = vpop.f32.mrf.mxu1  ;;  %v1037_v10 = vadd.f32 %v1036_v1, %v988_v8  ;;  %v1007_v56 = vpop.f32.mrf.mxu3  ;;  %v1005_v8 = vadd.f32 %v1004_v59, %v2066_v41 }
 0x14b   : > { %v1167_v5 = vmax.f32 %v1132_v0, 0.0  ;;  %v1086_v17 = vadd.f32 %v1085_v2, %v1037_v10 }
 0x14d   : > { %v1181_v7 = vpack.c.bf16 %v1167_v5, %v1166_v3 }
 0x14f   : > { %1269 = vmatmul.bf16.gmra.mxu3 %v1181_v7 }
 0x150   : > { %v1134_v6 = vpop.f32.mrf.mxu2  ;;  %v1038_v11 = vpop.f32.mrf.mxu0 }
 0x151   : > { %v1087_v12 = vpop.f32.mrf.mxu1  ;;  %v1039_v16 = vadd.f32 %v1038_v11, %v990_v9  ;;  %v1135_v18 = vadd.f32 %v1134_v6, %v1086_v17 }
 0x153   : > { %v1088_v19 = vadd.f32 %v1087_v12, %v1039_v16  ;;  %v1168_v30 = vmax.f32 %v1135_v18, 0.0 }
 0x158   : > { %v1136_v21 = vpop.f32.mrf.mxu2  ;;  %v1041_v26 = vpop.f32.mrf.mxu0 }
 0x159   : > { %v1137_v25 = vadd.f32 %v1136_v21, %v1088_v19  ;;  %v1090_v27 = vpop.f32.mrf.mxu1  ;;  %v1042_v33 = vadd.f32 %v1041_v26, %v993_v14 }
 0x15b   : > { %v1169_v31 = vmax.f32 %v1137_v25, 0.0  ;;  %v1091_v22 = vadd.f32 %v1090_v27, %v1042_v33  ;;  %v1009_v25 = vpop.f32.mrf.mxu3 }
 0x15c   : > { %v1010_v41 = vadd.f32 %v1009_v25, %v2082_v4 }
 0x15d   : > { %v1182_v32 = vpack.c.bf16 %v1169_v31, %v1168_v30  ;;  %v1008_v30 = vadd.f32 %v1007_v56, %v2073_v50 }
 0x15f   : > { %1274 = vmatmul.bf16.gmra.mxu3 %v1182_v32 }
 0x160   : > { %v1139_v28 = vpop.f32.mrf.mxu2  ;;  %v1043_v35 = vpop.f32.mrf.mxu0 }
 0x161   : > { %v1092_v37 = vpop.f32.mrf.mxu1  ;;  %v1044_v40 = vadd.f32 %v1043_v35, %v995_v29  ;;  %v1140_v42 = vadd.f32 %v1139_v28, %v1091_v22 }
 0x163   : > { %v1093_v43 = vadd.f32 %v1092_v37, %v1044_v40  ;;  %v1170_v49 = vmax.f32 %v1140_v42, 0.0  ;;  %v1012_v33 = vpop.f32.mrf.mxu3 }
 0x168   : > { %v1141_v44 = vpop.f32.mrf.mxu2  ;;  %v1046_v46 = vpop.f32.mrf.mxu0 }
 0x169   : > { %v1142_v45 = vadd.f32 %v1141_v44, %v1093_v43  ;;  %v1095_v47 = vpop.f32.mrf.mxu1  ;;  %v1047_v52 = vadd.f32 %v1046_v46, %v998_v36 }
 0x16b   : > { %v1171_v51 = vmax.f32 %v1142_v45, 0.0  ;;  %v1096_v58 = vadd.f32 %v1095_v47, %v1047_v52  ;;  %v1014_v50 = vpop.f32.mrf.mxu3  ;;  %v1013_v47 = vadd.f32 %v1012_v33, %v2086_v15  ;;  %v1692_v15 = vld [vmem:[%s2155_s4] ss:$0 sm:$0xff] }
 0x16d   : > { %v1183_v38 = vpack.c.bf16 %v1171_v51, %v1170_v49  ;;  %v1015_v49 = vadd.f32 %v1014_v50, %v2089_v24 }
 0x16f   : > { %1279 = vmatmul.bf16.gmra.mxu3 %v1183_v38 }
 0x170   : > { %v1144_v53 = vpop.f32.mrf.mxu2  ;;  %v1048_v54 = vpop.f32.mrf.mxu0 }
 0x171   : > { %v1097_v55 = vpop.f32.mrf.mxu1  ;;  %v1049_v57 = vadd.f32 %v1048_v54, %v1000_v48  ;;  %v1145_v60 = vadd.f32 %v1144_v53, %v1096_v58 }
 0x173   : > { %v1098_v61 = vadd.f32 %v1097_v55, %v1049_v57  ;;  %v1172_v3 = vmax.f32 %v1145_v60, 0.0 }
 0x178   : > { %v1146_v63 = vpop.f32.mrf.mxu2  ;;  %v1051_v1 = vpop.f32.mrf.mxu0 }
 0x179   : > { %v1147_v0 = vadd.f32 %v1146_v63, %v1098_v61  ;;  %v1100_v2 = vpop.f32.mrf.mxu1  ;;  %v1052_v6 = vadd.f32 %v1051_v1, %v1003_v62 }
 0x17b   : > { %v1173_v5 = vmax.f32 %v1147_v0, 0.0  ;;  %v1101_v12 = vadd.f32 %v1100_v2, %v1052_v6 }
 0x17d   : > { %v1184_v7 = vpack.c.bf16 %v1173_v5, %v1172_v3 }
 0x17f   : > { %1284 = vmatmul.bf16.gmra.mxu3 %v1184_v7 }
 0x180   : > { %v1149_v13 = vpop.f32.mrf.mxu2  ;;  %v1053_v9 = vpop.f32.mrf.mxu0 }
 0x181   : > { %v1102_v10 = vpop.f32.mrf.mxu1  ;;  %v1054_v11 = vadd.f32 %v1053_v9, %v1005_v8  ;;  %v1150_v16 = vadd.f32 %v1149_v13, %v1101_v12 }
 0x183   : > { %v1103_v17 = vadd.f32 %v1102_v10, %v1054_v11  ;;  %v1174_v26 = vmax.f32 %v1150_v16, 0.0 }
 0x188   : > { %v1151_v18 = vpop.f32.mrf.mxu2  ;;  %v1056_v20 = vpop.f32.mrf.mxu0 }
 0x189   : > { %v1152_v19 = vadd.f32 %v1151_v18, %v1103_v17  ;;  %v1105_v21 = vpop.f32.mrf.mxu1  ;;  %v1057_v32 = vadd.f32 %v1056_v20, %v1008_v30 }
 0x18b   : > { %v1175_v27 = vmax.f32 %v1152_v19, 0.0  ;;  %v1106_v35 = vadd.f32 %v1105_v21, %v1057_v32 }
 0x18d   : > { %v1185_v23 = vpack.c.bf16 %v1175_v27, %v1174_v26 }
 0x18f   : > { %1289 = vmatmul.bf16.gmra.mxu3 %v1185_v23 }
 0x190   : > { %v1154_v31 = vpop.f32.mrf.mxu2  ;;  %v1058_v14 = vpop.f32.mrf.mxu0 }
 0x191   : > { %v1107_v28 = vpop.f32.mrf.mxu1  ;;  %v1059_v29 = vadd.f32 %v1058_v14, %v1010_v41  ;;  %v1155_v37 = vadd.f32 %v1154_v31, %v1106_v35 }
 0x193   : > { %v1108_v39 = vadd.f32 %v1107_v28, %v1059_v29  ;;  %v1176_v43 = vmax.f32 %v1155_v37, 0.0 }
 0x198   : > { %v1156_v40 = vpop.f32.mrf.mxu2  ;;  %v1061_v42 = vpop.f32.mrf.mxu0 }
 0x199   : > { %v1157_v22 = vadd.f32 %v1156_v40, %v1108_v39  ;;  %v1110_v45 = vpop.f32.mrf.mxu1  ;;  %v1062_v51 = vadd.f32 %v1061_v42, %v1013_v47 }
 0x19b   : > { %v1177_v44 = vmax.f32 %v1157_v22, 0.0  ;;  %v1111_v36 = vadd.f32 %v1110_v45, %v1062_v51 }
 0x19d   : > { %v1186_v46 = vpack.c.bf16 %v1177_v44, %v1176_v43 }
 0x19f   : > { %1294 = vmatmul.bf16.gmra.mxu3 %v1186_v46 }
 0x1a0   : > { %v1159_v4 = vpop.f32.mrf.mxu2  ;;  %v1063_v34 = vpop.f32.mrf.mxu0 }
 0x1a1   : > { %v1064_v38 = vadd.f32 %v1063_v34, %v1015_v49  ;;  %v1112_v53 = vpop.f32.mrf.mxu1  ;;  %v1160_v48 = vadd.f32 %v1159_v4, %v1111_v36 }
 0x1a3   : > { %v1113_v52 = vadd.f32 %v1112_v53, %v1064_v38  ;;  %v1178_v57 = vmax.f32 %v1160_v48, 0.0 }
 0x1a8   : > { %v1161_v54 = vpop.f32.mrf.mxu2 }
 0x1a9   : > { %v1162_v55 = vadd.f32 %v1161_v54, %v1113_v52 }
 0x1ab   : > { %v1179_v58 = vmax.f32 %v1162_v55, 0.0 }
 0x1ad   : > { %v1187_v59 = vpack.c.bf16 %v1179_v58, %v1178_v57 }
 0x1af   : > { %1299 = vmatmul.bf16.gmra.mxu3 %v1187_v59 }
 0x1c2   : > { %v1265_v24 = vpop.f32.mrf.mxu3 }
 0x1c3   : > { %v1266_v60 = vadd.f32 %v1692_v15, %v1265_v24 }
 0x1c5   : > { %1306 = vst.msk [vmem:[%s2114_s7] sm:$0xff] %vm1305_vm1, %v1266_v60 }
 0x1ca   : > { %v1267_v61 = vpop.f32.mrf.mxu3 }
 0x1cb   : > { %v1268_v63 = vadd.f32 %v1692_v15, %v1267_v61 }
 0x1cd   : > { %1307 = vst.msk [vmem:[%s2114_s7 + $0x8] sm:$0xff] %vm1305_vm1, %v1268_v63 }
 0x1d2   : > { %v1270_v0 = vpop.f32.mrf.mxu3 }
 0x1d3   : > { %v1271_v1 = vadd.f32 %v1692_v15, %v1270_v0 }
 0x1d5   : > { %1308 = vst.msk [vmem:[%s2114_s7 + $0x10] sm:$0xff] %vm1305_vm1, %v1271_v1 }
 0x1da   : > { %v1272_v2 = vpop.f32.mrf.mxu3 }
 0x1db   : > { %v1273_v3 = vadd.f32 %v1692_v15, %v1272_v2 }
 0x1dd   : > { %1309 = vst.msk [vmem:[%s2114_s7 + $0x18] sm:$0xff] %vm1305_vm1, %v1273_v3 }
 0x1e2   : > { %v1275_v5 = vpop.f32.mrf.mxu3 }
 0x1e3   : > { %v1276_v7 = vadd.f32 %v1692_v15, %v1275_v5 }
 0x1e5   : > { %1310 = vst.msk [vmem:[%s2114_s7 + $0x20] sm:$0xff] %vm1305_vm1, %v1276_v7 }
 0x1ea   : > { %v1277_v62 = vpop.f32.mrf.mxu3 }
 0x1eb   : > { %v1278_v56 = vadd.f32 %v1692_v15, %v1277_v62 }
 0x1ed   : > { %1311 = vst.msk [vmem:[%s2114_s7 + $0x28] sm:$0xff] %vm1305_vm1, %v1278_v56 }
 0x1f2   : > { %v1280_v13 = vpop.f32.mrf.mxu3 }
 0x1f3   : > { %v1281_v8 = vadd.f32 %v1692_v15, %v1280_v13 }
 0x1f5   : > { %1312 = vst.msk [vmem:[%s2114_s7 + $0x30] sm:$0xff] %vm1305_vm1, %v1281_v8 }
 0x1fa   : > { %v1282_v6 = vpop.f32.mrf.mxu3 }
 0x1fb   : > { %v1283_v9 = vadd.f32 %v1692_v15, %v1282_v6 }
 0x1fd   : > { %1313 = vst.msk [vmem:[%s2114_s7 + $0x38] sm:$0xff] %vm1305_vm1, %v1283_v9 }
 0x202   : > { %v1285_v10 = vpop.f32.mrf.mxu3 }
 0x203   : > { %v1286_v11 = vadd.f32 %v1692_v15, %v1285_v10 }
 0x205   : > { %1314 = vst.msk [vmem:[%s2114_s7 + $0x40] sm:$0xff] %vm1305_vm1, %v1286_v11 }
 0x20a   : > { %v1287_v12 = vpop.f32.mrf.mxu3 }
 0x20b   : > { %v1288_v16 = vadd.f32 %v1692_v15, %v1287_v12 }
 0x20d   : > { %1315 = vst.msk [vmem:[%s2114_s7 + $0x48] sm:$0xff] %vm1305_vm1, %v1288_v16 }
 0x212   : > { %v1290_v17 = vpop.f32.mrf.mxu3 }
 0x213   : > { %v1291_v18 = vadd.f32 %v1692_v15, %v1290_v17 }
 0x215   : > { %1316 = vst.msk [vmem:[%s2114_s7 + $0x50] sm:$0xff] %vm1305_vm1, %v1291_v18 }
 0x21a   : > { %v1292_v19 = vpop.f32.mrf.mxu3 }
 0x21b   : > { %v1293_v20 = vadd.f32 %v1692_v15, %v1292_v19 }
 0x21d   : > { %1317 = vst.msk [vmem:[%s2114_s7 + $0x58] sm:$0xff] %vm1305_vm1, %v1293_v20 }
 0x222   : > { %v1295_v21 = vpop.f32.mrf.mxu3 }
 0x223   : > { %v1296_v25 = vadd.f32 %v1692_v15, %v1295_v21 }
 0x225   : > { %1318 = vst.msk [vmem:[%s2114_s7 + $0x60] sm:$0xff] %vm1305_vm1, %v1296_v25 }
 0x22a   : > { %v1297_v26 = vpop.f32.mrf.mxu3 }
 0x22b   : > { %v1298_v27 = vadd.f32 %v1692_v15, %v1297_v26 }
 0x22d   : > { %1319 = vst.msk [vmem:[%s2114_s7 + $0x68] sm:$0xff] %vm1305_vm1, %v1298_v27 }
 0x232   : > { %v1300_v23 = vpop.f32.mrf.mxu3 }
 0x233   : > { %v1301_v30 = vadd.f32 %v1692_v15, %v1300_v23 }
 0x235   : > { %1320 = vst.msk [vmem:[%s2114_s7 + $0x70] sm:$0xff] %vm1305_vm1, %v1301_v30 }
 0x23a   : > { %v1302_v31 = vpop.f32.mrf.mxu3 }
 0x23b   : > { %v1303_v41 = vadd.f32 %v1692_v15, %v1302_v31 }
 0x23d   : > { %1321 = vst.msk [vmem:[%s2114_s7 + $0x78] sm:$0xff] %vm1305_vm1, %v1303_v41 }
 0x23e PF: > { %s15_s18 = sadd.s32 1, %s1699_s18  }
 0x23f   : > { %p12_p4 = scmp.ge.s32.totalorder %s15_s18, 4  }
 0x241   :  { %14 = sbr.rel (!%p12_p4) target bundleno = 1 (0x1), region = 70 }

</bundles_post_ra>
